<compile_context>
chip_gen: v6e
topology: v6e:2x2x1
jax: 0.10.0
libtpu: 0.0.40
codegen_flags: <defaults>
</compile_context>

<pallas_src>
import functools

import jax
import jax.numpy as jnp
from jax.experimental import pallas as pl
from jax.experimental.pallas import tpu as pltpu


_NEG_BIG = -1e30  # large finite "masked" logit (avoids inf-inf NaNs)


def _spatial_gather_kernel(bidx_ref, probs_ref, feats_ref, out_ref,
                           m_ref, l_ref, acc_ref, *, scale, batch_size):
    p = pl.program_id(0)

    @pl.when(p == 0)
    def _init():
        m_ref[...] = jnp.full_like(m_ref, _NEG_BIG)
        l_ref[...] = jnp.zeros_like(l_ref)
        acc_ref[...] = jnp.zeros_like(acc_ref)

    logits = probs_ref[...].astype(jnp.float32)            # [K, tP]
    if scale != 1.0:                                       # trace-time branch
        logits = logits * jnp.float32(scale)
    bidx = bidx_ref[...]                                   # [1, tP] int32
    feats = feats_ref[...]                                 # [tP, C] (orig dtype)

    # Online (flash-style) masked softmax + accumulate, per batch element.
    # batch_size is a small static Python int -> unrolled.
    for b in range(batch_size):
        mask = bidx == b                                   # [1, tP]
        masked = jnp.where(mask, logits, _NEG_BIG)         # [K, tP]
        m_old = m_ref[b]                                   # [K, 1]
        m_new = jnp.maximum(m_old, jnp.max(masked, axis=1, keepdims=True))
        alpha = jnp.exp(m_old - m_new)                     # [K, 1]
        e = jnp.where(mask, jnp.exp(masked - m_new), 0.0)  # [K, tP]
        l_ref[b] = alpha * l_ref[b] + jnp.sum(e, axis=1, keepdims=True)
        acc_ref[b] = alpha * acc_ref[b] + jax.lax.dot_general(
            e.astype(feats.dtype), feats,
            dimension_numbers=(((1,), (0,)), ((), ())),
            preferred_element_type=jnp.float32,
        )                                                  # [K, C]
        m_ref[b] = m_new

    @pl.when(p == pl.num_programs(0) - 1)
    def _finalize():
        # Deferred normalization: one reciprocal per (batch, class), then a
        # [B, K, C] multiply.  Clamp guards empty groups (output -> 0).
        inv = pl.reciprocal(jnp.maximum(l_ref[...], 1e-30))   # [B, K, 1]
        out_ref[...] = (acc_ref[...] * inv).astype(out_ref.dtype)


def _choose_tile_p(P, C, K, feat_itemsize, prob_itemsize,
                   budget_bytes=8 * 1024 * 1024):
    """Largest point tile whose double-buffered DMA footprint fits the budget
    (conservative so it works on v5e's 16 MiB scoped / v7x's 64 MiB VMEM)."""
    if P <= 128:
        return P
    max_tile = pl.cdiv(P, 128) * 128
    tile = 128
    for cand in (256, 512, 1024, 2048, 4096):
        if cand > max_tile:
            break
        per_step = 2 * cand * (C * feat_itemsize + K * prob_itemsize + 4)
        if per_step <= budget_bytes:
            tile = cand
    return tile


def spatial_gather(feats, probs, batch_size, batch_indices, *,
                   scale=1.0, tile_p=None):
    """feats: [P, C], probs: [P, K], batch_indices: [P] int -> [B, K, C]."""
    P, C = feats.shape
    P2, K = probs.shape
    assert P2 == P, "feats and probs must share the point axis"

    if tile_p is None:
        tile_p = _choose_tile_p(P, C, K, feats.dtype.itemsize,
                                probs.dtype.itemsize)
    if tile_p >= P:
        tile_p = P                       # single tile: block == full array dim
    else:
        tile_p = max(128, (tile_p // 128) * 128)   # (8,128) lane constraint

    P_pad = pl.cdiv(P, tile_p) * tile_p
    bidx = batch_indices.astype(jnp.int32)
    if P_pad != P:
        pad = P_pad - P
        feats = jnp.pad(feats, ((0, pad), (0, 0)))
        probs = jnp.pad(probs, ((0, pad), (0, 0)))
        bidx = jnp.pad(bidx, (0, pad), constant_values=-1)   # never matches b

    probs_t = probs.T                    # [K, P_pad]: point axis on lanes
    bidx2d = bidx.reshape(1, P_pad)      # lane-dense id row
    n_tiles = P_pad // tile_p

    kernel = functools.partial(_spatial_gather_kernel,
                               scale=float(scale),
                               batch_size=int(batch_size))

    return pl.pallas_call(
        kernel,
        out_shape=jax.ShapeDtypeStruct((batch_size, K, C), feats.dtype),
        grid_spec=pltpu.PrefetchScalarGridSpec(
            num_scalar_prefetch=0,
            grid=(n_tiles,),
            in_specs=[
                pl.BlockSpec((1, tile_p), lambda p: (0, p)),       # batch ids
                pl.BlockSpec((K, tile_p), lambda p: (0, p)),       # probs^T
                pl.BlockSpec((tile_p, C), lambda p: (p, 0)),       # feats
            ],
            out_specs=pl.BlockSpec((batch_size, K, C), lambda p: (0, 0, 0)),
            scratch_shapes=[
                pltpu.VMEM((batch_size, K, 1), jnp.float32),   # running max
                pltpu.VMEM((batch_size, K, 1), jnp.float32),   # running denom
                pltpu.VMEM((batch_size, K, C), jnp.float32),   # unnorm context
            ],
        ),
        compiler_params=pltpu.CompilerParams(
            dimension_semantics=("arbitrary",),
            vmem_limit_bytes=32 * 1024 * 1024,
        ),
    )(bidx2d, probs_t, feats)


def _reference(feats, probs, batch_size, batch_indices, scale):
    """Pure-JAX reference mirroring the PyTorch forward (mask-based)."""
    outs = []
    for i in range(batch_size):
        mask = (batch_indices == i)[:, None]                 # [P, 1]
        logits = jnp.where(mask, scale * probs, -jnp.inf)    # [P, K]
        w = jax.nn.softmax(logits, axis=0)                   # [P, K]
        w = jnp.where(mask, w, 0.0)
        outs.append((w.T @ feats)[None])                     # [1, K, C]
    return jnp.concatenate(outs, axis=0)                     # [B, K, C]


if __name__ == "__main__":
    key = jax.random.PRNGKey(0)
    k1, k2, k3 = jax.random.split(key, 3)

    batch_size = 2
    points_per_batch = 100
    P = batch_size * points_per_batch    # total points across the batch
    C = 32                               # feature channels
    K = 8                                # number of classes
    scale = 1.0                          # SpatialGatherModule(scale)

    feats = jax.random.normal(k1, (P, C), dtype=jnp.float32)
    probs = jax.random.normal(k2, (P, K), dtype=jnp.float32)
    batch_indices = jnp.repeat(jnp.arange(batch_size, dtype=jnp.int32),
                               points_per_batch)
    # Shuffle so the kernel is exercised with arbitrary (non-contiguous)
    # point-to-batch assignment, like the PyTorch mask-based forward.
    perm = jax.random.permutation(k3, P)
    batch_indices = batch_indices[perm]

    # tile_p=128 -> P padded to 256, two point tiles: exercises the multi-tile
    # online-softmax path and the padded-tail masking.
    out = spatial_gather(feats, probs, batch_size, batch_indices,
                         scale=scale, tile_p=128)
    out = jax.block_until_ready(out)

    ref = _reference(feats, probs, batch_size, batch_indices, scale)
    assert out.shape == (batch_size, K, C)
    err = float(jnp.max(jnp.abs(out - ref)))
    assert jnp.allclose(out, ref, atol=1e-4, rtol=1e-4), err

    print("KERNEL_OK")
</pallas_src>

<mosaic_0001>
module attributes {stable_mosaic.version = 11 : i64} {
  func.func @_spatial_gather_kernel(%arg0: i32, %arg1: memref<1x128xi32, #tpu.memory_space<vmem>>, %arg2: memref<8x128xf32, #tpu.memory_space<vmem>>, %arg3: memref<128x32xf32, #tpu.memory_space<vmem>>, %arg4: memref<2x8x32xf32, #tpu.memory_space<vmem>>, %arg5: memref<2x8x1xf32, #tpu.memory_space<vmem>>, %arg6: memref<2x8x1xf32, #tpu.memory_space<vmem>>, %arg7: memref<2x8x32xf32, #tpu.memory_space<vmem>>) attributes {dimension_semantics = [#tpu.dimension_semantics<arbitrary>], iteration_bounds = array<i64: 2>, scalar_prefetch = 0 : i64, scratch_operands = 3 : i64, tpu.core_type = #tpu.core_type<tc>, window_params = [{transform_indices = @transform_0, window_bounds = array<i64: 1, 128>}, {transform_indices = @transform_1, window_bounds = array<i64: 8, 128>}, {transform_indices = @transform_2, window_bounds = array<i64: 128, 32>}, {pipeline_mode = #tpu.pipeline_mode<synchronous>, transform_indices = @transform_3, window_bounds = array<i64: 2, 8, 32>}]} {
    %c0_i32 = arith.constant 0 : i32
    %0 = arith.cmpi eq, %arg0, %c0_i32 : i32
    %1 = arith.extui %0 : i1 to i32
    %c0_i32_0 = arith.constant 0 : i32
    %2 = arith.cmpi ne, %1, %c0_i32_0 : i32
    scf.if %2 {
      %cst_53 = arith.constant -1.000000e+30 : f32
      %91 = vector.broadcast %cst_53 : f32 to vector<2x8x1xf32>
      %c0_54 = arith.constant 0 : index
      %c0_55 = arith.constant 0 : index
      %c0_56 = arith.constant 0 : index
      %92 = vector.load %arg5[%c0_54, %c0_55, %c0_56] : memref<2x8x1xf32, #tpu.memory_space<vmem>>, vector<2x8x1xf32>
      tpu.vector_store %arg5[%c0_54, %c0_55, %c0_56], %91 {strides = array<i32>} : memref<2x8x1xf32, #tpu.memory_space<vmem>>, vector<2x8x1xf32>,
      %cst_57 = arith.constant 0.000000e+00 : f32
      %93 = vector.broadcast %cst_57 : f32 to vector<2x8x1xf32>
      %c0_58 = arith.constant 0 : index
      %c0_59 = arith.constant 0 : index
      %c0_60 = arith.constant 0 : index
      %94 = vector.load %arg6[%c0_58, %c0_59, %c0_60] : memref<2x8x1xf32, #tpu.memory_space<vmem>>, vector<2x8x1xf32>
      tpu.vector_store %arg6[%c0_58, %c0_59, %c0_60], %93 {strides = array<i32>} : memref<2x8x1xf32, #tpu.memory_space<vmem>>, vector<2x8x1xf32>,
      %cst_61 = arith.constant 0.000000e+00 : f32
      %95 = vector.broadcast %cst_61 : f32 to vector<2x8x32xf32>
      %c0_62 = arith.constant 0 : index
      %c0_63 = arith.constant 0 : index
      %c0_64 = arith.constant 0 : index
      %96 = vector.load %arg7[%c0_62, %c0_63, %c0_64] : memref<2x8x32xf32, #tpu.memory_space<vmem>>, vector<2x8x32xf32>
      tpu.vector_store %arg7[%c0_62, %c0_63, %c0_64], %95 {strides = array<i32>} : memref<2x8x32xf32, #tpu.memory_space<vmem>>, vector<2x8x32xf32>,
    } else {
    }
    %c0 = arith.constant 0 : index
    %c0_1 = arith.constant 0 : index
    %3 = vector.load %arg2[%c0, %c0_1] : memref<8x128xf32, #tpu.memory_space<vmem>>, vector<8x128xf32>
    %c0_2 = arith.constant 0 : index
    %c0_3 = arith.constant 0 : index
    %4 = vector.load %arg1[%c0_2, %c0_3] : memref<1x128xi32, #tpu.memory_space<vmem>>, vector<1x128xi32>
    %c0_4 = arith.constant 0 : index
    %c0_5 = arith.constant 0 : index
    %5 = vector.load %arg3[%c0_4, %c0_5] : memref<128x32xf32, #tpu.memory_space<vmem>>, vector<128x32xf32>
    %c0_i32_6 = arith.constant 0 : i32
    %6 = vector.broadcast %c0_i32_6 : i32 to vector<1x128xi32>
    %7 = arith.cmpi eq, %4, %6 : vector<1x128xi32>
    %cst = arith.constant -1.000000e+30 : f32
    %8 = vector.shape_cast %7 : vector<1x128xi1> to vector<1x128xi1>
    %9 = vector.broadcast %8 : vector<1x128xi1> to vector<8x128xi1>
    %10 = vector.broadcast %cst : f32 to vector<8x128xf32>
    %11 = arith.select %9, %3, %10 : vector<8x128xi1>, vector<8x128xf32>
    %c0_7 = arith.constant 0 : index
    %c0_8 = arith.constant 0 : index
    %c0_9 = arith.constant 0 : index
    %12 = vector.load %arg5[%c0_7, %c0_8, %c0_9] : memref<2x8x1xf32, #tpu.memory_space<vmem>>, vector<1x8x1xf32>
    %13 = vector.shape_cast %12 : vector<1x8x1xf32> to vector<8x1xf32>
    %cst_10 = arith.constant dense<0xFF800000> : vector<8xf32>
    %14 = vector.multi_reduction <maximumf>, %11, %cst_10 [1] : vector<8x128xf32> to vector<8xf32>
    %15 = vector.shape_cast %14 : vector<8xf32> to vector<8x1xf32>
    %16 = arith.maximumf %13, %15 : vector<8x1xf32>
    %17 = arith.subf %13, %16 : vector<8x1xf32>
    %18 = math.exp %17 : vector<8x1xf32>
    %19 = vector.broadcast %16 : vector<8x1xf32> to vector<8x128xf32>
    %20 = arith.subf %11, %19 : vector<8x128xf32>
    %21 = math.exp %20 : vector<8x128xf32>
    %cst_11 = arith.constant 0.000000e+00 : f32
    %22 = vector.shape_cast %7 : vector<1x128xi1> to vector<1x128xi1>
    %23 = vector.broadcast %22 : vector<1x128xi1> to vector<8x128xi1>
    %24 = vector.broadcast %cst_11 : f32 to vector<8x128xf32>
    %25 = arith.select %23, %21, %24 : vector<8x128xi1>, vector<8x128xf32>
    %c0_12 = arith.constant 0 : index
    %c0_13 = arith.constant 0 : index
    %c0_14 = arith.constant 0 : index
    %26 = vector.load %arg6[%c0_12, %c0_13, %c0_14] : memref<2x8x1xf32, #tpu.memory_space<vmem>>, vector<1x8x1xf32>
    %27 = vector.shape_cast %26 : vector<1x8x1xf32> to vector<8x1xf32>
    %28 = arith.mulf %18, %27 : vector<8x1xf32>
    %cst_15 = arith.constant dense<0.000000e+00> : vector<8xf32>
    %29 = vector.multi_reduction <add>, %25, %cst_15 [1] : vector<8x128xf32> to vector<8xf32>
    %30 = vector.shape_cast %29 : vector<8xf32> to vector<8x1xf32>
    %31 = arith.addf %28, %30 : vector<8x1xf32>
    %c0_16 = arith.constant 0 : index
    %c0_17 = arith.constant 0 : index
    %c0_18 = arith.constant 0 : index
    %32 = vector.load %arg6[%c0_16, %c0_17, %c0_18] : memref<2x8x1xf32, #tpu.memory_space<vmem>>, vector<1x8x1xf32>
    %33 = vector.shape_cast %32 : vector<1x8x1xf32> to vector<8x1xf32>
    %34 = vector.shape_cast %31 : vector<8x1xf32> to vector<1x8x1xf32>
    tpu.vector_store %arg6[%c0_16, %c0_17, %c0_18], %34 {strides = array<i32>} : memref<2x8x1xf32, #tpu.memory_space<vmem>>, vector<1x8x1xf32>,
    %c0_19 = arith.constant 0 : index
    %c0_20 = arith.constant 0 : index
    %c0_21 = arith.constant 0 : index
    %35 = vector.load %arg7[%c0_19, %c0_20, %c0_21] : memref<2x8x32xf32, #tpu.memory_space<vmem>>, vector<1x8x32xf32>
    %36 = vector.shape_cast %35 : vector<1x8x32xf32> to vector<8x32xf32>
    %37 = vector.broadcast %18 : vector<8x1xf32> to vector<8x32xf32>
    %38 = arith.mulf %37, %36 : vector<8x32xf32>
    %cst_22 = arith.constant dense<0.000000e+00> : vector<8x32xf32>
    %39 = tpu.matmul %25, %5, %cst_22 {dimension_numbers = #tpu.dot_dimension_numbers<[1], [0], [0], [1], [0, 0, 1, 1], [], []>} : vector<8x128xf32>, vector<128x32xf32>, vector<8x32xf32> -> vector<8x32xf32>
    %40 = arith.addf %38, %39 : vector<8x32xf32>
    %c0_23 = arith.constant 0 : index
    %c0_24 = arith.constant 0 : index
    %c0_25 = arith.constant 0 : index
    %41 = vector.load %arg7[%c0_23, %c0_24, %c0_25] : memref<2x8x32xf32, #tpu.memory_space<vmem>>, vector<1x8x32xf32>
    %42 = vector.shape_cast %41 : vector<1x8x32xf32> to vector<8x32xf32>
    %43 = vector.shape_cast %40 : vector<8x32xf32> to vector<1x8x32xf32>
    tpu.vector_store %arg7[%c0_23, %c0_24, %c0_25], %43 {strides = array<i32>} : memref<2x8x32xf32, #tpu.memory_space<vmem>>, vector<1x8x32xf32>,
    %c0_26 = arith.constant 0 : index
    %c0_27 = arith.constant 0 : index
    %c0_28 = arith.constant 0 : index
    %44 = vector.load %arg5[%c0_26, %c0_27, %c0_28] : memref<2x8x1xf32, #tpu.memory_space<vmem>>, vector<1x8x1xf32>
    %45 = vector.shape_cast %44 : vector<1x8x1xf32> to vector<8x1xf32>
    %46 = vector.shape_cast %16 : vector<8x1xf32> to vector<1x8x1xf32>
    tpu.vector_store %arg5[%c0_26, %c0_27, %c0_28], %46 {strides = array<i32>} : memref<2x8x1xf32, #tpu.memory_space<vmem>>, vector<1x8x1xf32>,
    %c1_i32 = arith.constant 1 : i32
    %47 = vector.broadcast %c1_i32 : i32 to vector<1x128xi32>
    %48 = arith.cmpi eq, %4, %47 : vector<1x128xi32>
    %cst_29 = arith.constant -1.000000e+30 : f32
    %49 = vector.shape_cast %48 : vector<1x128xi1> to vector<1x128xi1>
    %50 = vector.broadcast %49 : vector<1x128xi1> to vector<8x128xi1>
    %51 = vector.broadcast %cst_29 : f32 to vector<8x128xf32>
    %52 = arith.select %50, %3, %51 : vector<8x128xi1>, vector<8x128xf32>
    %c1 = arith.constant 1 : index
    %c0_30 = arith.constant 0 : index
    %c0_31 = arith.constant 0 : index
    %53 = vector.load %arg5[%c1, %c0_30, %c0_31] : memref<2x8x1xf32, #tpu.memory_space<vmem>>, vector<1x8x1xf32>
    %54 = vector.shape_cast %53 : vector<1x8x1xf32> to vector<8x1xf32>
    %cst_32 = arith.constant dense<0xFF800000> : vector<8xf32>
    %55 = vector.multi_reduction <maximumf>, %52, %cst_32 [1] : vector<8x128xf32> to vector<8xf32>
    %56 = vector.shape_cast %55 : vector<8xf32> to vector<8x1xf32>
    %57 = arith.maximumf %54, %56 : vector<8x1xf32>
    %58 = arith.subf %54, %57 : vector<8x1xf32>
    %59 = math.exp %58 : vector<8x1xf32>
    %60 = vector.broadcast %57 : vector<8x1xf32> to vector<8x128xf32>
    %61 = arith.subf %52, %60 : vector<8x128xf32>
    %62 = math.exp %61 : vector<8x128xf32>
    %cst_33 = arith.constant 0.000000e+00 : f32
    %63 = vector.shape_cast %48 : vector<1x128xi1> to vector<1x128xi1>
    %64 = vector.broadcast %63 : vector<1x128xi1> to vector<8x128xi1>
    %65 = vector.broadcast %cst_33 : f32 to vector<8x128xf32>
    %66 = arith.select %64, %62, %65 : vector<8x128xi1>, vector<8x128xf32>
    %c1_34 = arith.constant 1 : index
    %c0_35 = arith.constant 0 : index
    %c0_36 = arith.constant 0 : index
    %67 = vector.load %arg6[%c1_34, %c0_35, %c0_36] : memref<2x8x1xf32, #tpu.memory_space<vmem>>, vector<1x8x1xf32>
    %68 = vector.shape_cast %67 : vector<1x8x1xf32> to vector<8x1xf32>
    %69 = arith.mulf %59, %68 : vector<8x1xf32>
    %cst_37 = arith.constant dense<0.000000e+00> : vector<8xf32>
    %70 = vector.multi_reduction <add>, %66, %cst_37 [1] : vector<8x128xf32> to vector<8xf32>
    %71 = vector.shape_cast %70 : vector<8xf32> to vector<8x1xf32>
    %72 = arith.addf %69, %71 : vector<8x1xf32>
    %c1_38 = arith.constant 1 : index
    %c0_39 = arith.constant 0 : index
    %c0_40 = arith.constant 0 : index
    %73 = vector.load %arg6[%c1_38, %c0_39, %c0_40] : memref<2x8x1xf32, #tpu.memory_space<vmem>>, vector<1x8x1xf32>
    %74 = vector.shape_cast %73 : vector<1x8x1xf32> to vector<8x1xf32>
    %75 = vector.shape_cast %72 : vector<8x1xf32> to vector<1x8x1xf32>
    tpu.vector_store %arg6[%c1_38, %c0_39, %c0_40], %75 {strides = array<i32>} : memref<2x8x1xf32, #tpu.memory_space<vmem>>, vector<1x8x1xf32>,
    %c1_41 = arith.constant 1 : index
    %c0_42 = arith.constant 0 : index
    %c0_43 = arith.constant 0 : index
    %76 = vector.load %arg7[%c1_41, %c0_42, %c0_43] : memref<2x8x32xf32, #tpu.memory_space<vmem>>, vector<1x8x32xf32>
    %77 = vector.shape_cast %76 : vector<1x8x32xf32> to vector<8x32xf32>
    %78 = vector.broadcast %59 : vector<8x1xf32> to vector<8x32xf32>
    %79 = arith.mulf %78, %77 : vector<8x32xf32>
    %cst_44 = arith.constant dense<0.000000e+00> : vector<8x32xf32>
    %80 = tpu.matmul %66, %5, %cst_44 {dimension_numbers = #tpu.dot_dimension_numbers<[1], [0], [0], [1], [0, 0, 1, 1], [], []>} : vector<8x128xf32>, vector<128x32xf32>, vector<8x32xf32> -> vector<8x32xf32>
    %81 = arith.addf %79, %80 : vector<8x32xf32>
    %c1_45 = arith.constant 1 : index
    %c0_46 = arith.constant 0 : index
    %c0_47 = arith.constant 0 : index
    %82 = vector.load %arg7[%c1_45, %c0_46, %c0_47] : memref<2x8x32xf32, #tpu.memory_space<vmem>>, vector<1x8x32xf32>
    %83 = vector.shape_cast %82 : vector<1x8x32xf32> to vector<8x32xf32>
    %84 = vector.shape_cast %81 : vector<8x32xf32> to vector<1x8x32xf32>
    tpu.vector_store %arg7[%c1_45, %c0_46, %c0_47], %84 {strides = array<i32>} : memref<2x8x32xf32, #tpu.memory_space<vmem>>, vector<1x8x32xf32>,
    %c1_48 = arith.constant 1 : index
    %c0_49 = arith.constant 0 : index
    %c0_50 = arith.constant 0 : index
    %85 = vector.load %arg5[%c1_48, %c0_49, %c0_50] : memref<2x8x1xf32, #tpu.memory_space<vmem>>, vector<1x8x1xf32>
    %86 = vector.shape_cast %85 : vector<1x8x1xf32> to vector<8x1xf32>
    %87 = vector.shape_cast %57 : vector<8x1xf32> to vector<1x8x1xf32>
    tpu.vector_store %arg5[%c1_48, %c0_49, %c0_50], %87 {strides = array<i32>} : memref<2x8x1xf32, #tpu.memory_space<vmem>>, vector<1x8x1xf32>,
    %c1_i32_51 = arith.constant 1 : i32
    %88 = arith.cmpi eq, %arg0, %c1_i32_51 : i32
    %89 = arith.extui %88 : i1 to i32
    %c0_i32_52 = arith.constant 0 : i32
    %90 = arith.cmpi ne, %89, %c0_i32_52 : i32
    scf.if %90 {
      %c0_53 = arith.constant 0 : index
      %c0_54 = arith.constant 0 : index
      %c0_55 = arith.constant 0 : index
      %91 = vector.load %arg6[%c0_53, %c0_54, %c0_55] : memref<2x8x1xf32, #tpu.memory_space<vmem>>, vector<2x8x1xf32>
      %cst_56 = arith.constant 1.000000e-30 : f32
      %92 = vector.broadcast %cst_56 : f32 to vector<2x8x1xf32>
      %93 = arith.maximumf %91, %92 : vector<2x8x1xf32>
      %94 = tpu.reciprocal %93 : vector<2x8x1xf32> -> vector<2x8x1xf32>
      %c0_57 = arith.constant 0 : index
      %c0_58 = arith.constant 0 : index
      %c0_59 = arith.constant 0 : index
      %95 = vector.load %arg7[%c0_57, %c0_58, %c0_59] : memref<2x8x32xf32, #tpu.memory_space<vmem>>, vector<2x8x32xf32>
      %96 = vector.broadcast %94 : vector<2x8x1xf32> to vector<2x8x32xf32>
      %97 = arith.mulf %95, %96 : vector<2x8x32xf32>
      %c0_60 = arith.constant 0 : index
      %c0_61 = arith.constant 0 : index
      %c0_62 = arith.constant 0 : index
      %98 = vector.load %arg4[%c0_60, %c0_61, %c0_62] : memref<2x8x32xf32, #tpu.memory_space<vmem>>, vector<2x8x32xf32>
      tpu.vector_store %arg4[%c0_60, %c0_61, %c0_62], %97 {strides = array<i32>} : memref<2x8x32xf32, #tpu.memory_space<vmem>>, vector<2x8x32xf32>,
    } else {
    }
    return
  }
  func.func @transform_0(%arg0: i32) -> (i32, i32) {
    %c0_i32 = arith.constant 0 : i32
    %c0_i32_0 = arith.constant 0 : i32
    return %c0_i32, %arg0 : i32, i32
  }
  func.func @transform_1(%arg0: i32) -> (i32, i32) {
    %c0_i32 = arith.constant 0 : i32
    %c0_i32_0 = arith.constant 0 : i32
    return %c0_i32, %arg0 : i32, i32
  }
  func.func @transform_2(%arg0: i32) -> (i32, i32) {
    %c0_i32 = arith.constant 0 : i32
    %c0_i32_0 = arith.constant 0 : i32
    return %arg0, %c0_i32 : i32, i32
  }
  func.func @transform_3(%arg0: i32) -> (i32, i32, i32) {
    %c0_i32 = arith.constant 0 : i32
    %c0_i32_0 = arith.constant 0 : i32
    %c0_i32_1 = arith.constant 0 : i32
    %c0_i32_2 = arith.constant 0 : i32
    return %c0_i32, %c0_i32_0, %c0_i32_1 : i32, i32, i32
  }
}

</mosaic_0001>

<bundles_post_ra>
// kernel: tpu_custom_call.1
= control target key start
LH: loop header
LB: loop body
LE: loop exit
PB: predicated region body
PF: predicated region fallthrough
CT: control target
= control target key end

     0   :  { %8 = vsyncpa [#allocation6], 0  ;;  %s762_s12 = smov 0   ;;  %s887_s0 = inlined_call_operand.vmem [shape: s32[1,256], index: 0, kind: input, shape index: {}]   ;;  %s888_s1 = inlined_call_operand.vmem [shape: f32[8,256], index: 1, kind: input, shape index: {}]   ;;  %s889_s2 = inlined_call_operand.vmem [shape: f32[256,32], index: 2, kind: input, shape index: {}]   ;;  %s890_s3 = inlined_call_operand.hbm [shape: f32[2,8,32], index: 3, kind: output, shape index: {}]  }
   0x1 LB: > { %s768_s13 = sadd.s32 4294967295, %s731_s12   ;;  %p543_p0 = scmp.ge.s32.totalorder %s731_s12, 1  ;;  %s731_s12 = sphi %s762_s12, %s14_s12  }
   0x2   : > { %p151_p1 = scmp.lt.s32.totalorder %s731_s12, 3 }
   0x4   : > { %p152_p2 = pnand %p543_p0, %p151_p1 }
   0x5   : > { %p177_p3 = scmp.lt.s32.totalorder (!%p152_p2), %s768_s13, 1  ;;  %s545_s14 = sshll.u32 (!%p152_p2), %s768_s13, 4 }
   0x6   : > { %155 = sbr.rel (%p152_p2) target bundleno = 677 (0x2a5), region = 32  ;;  %p185_p4 = scmp.lt.s32.totalorder (!%p152_p2), %s545_s14, 31 }
   0x7   : > { %p547_p5 = scmp.ne.s32.totalorder (!%p152_p2), %s768_s13, 0 }
   0xb   : > { %s178_s15 = scalar_select %p177_p3, %s768_s13, 1 }
   0xc   : > { %s892_s14 = smov (!%p185_p4, %s545_s14), 31  ;;  %193 = sbr.rel (%p547_p5) target bundleno = 21 (0x15), region = 36 }
   0xd   : > { %s179_s18 = scalar_lea.vmem %s887_s0, %s178_s15  ;;  %s544_s19 = sshll.u32 %s178_s15, 3 }
   0xe   : > { %s183_s22 = scalar_lea.vmem %s888_s1, %s544_s19  ;;  %s546_s23 = sshll.u32 %s892_s14, 3 }
   0xf   : > { %s784_s26 = scalar_lea.vmem %s889_s2, %s546_s23 }
  0x11   : > { %vm194_vm0 = vcmask 7168   ;;  %vm199_vm1 = vcmask 261120   ;;  %v733_v0 = vmov -1e+30   ;;  %v734_v1 = vmov 0.0  }
  0x12   : > { %195 = vst.msk [vmem:[#allocation2] sm:$0xff] %vm194_vm0, %v733_v0  ;;  %196 = vst.msk [vmem:[#allocation2 + $0x8] sm:$0xff] %vm194_vm0, %v733_v0 }
  0x13   : > { %197 = vst.msk [vmem:[#allocation3] sm:$0xff] %vm194_vm0, %v734_v1  ;;  %198 = vst.msk [vmem:[#allocation3 + $0x8] sm:$0xff] %vm194_vm0, %v734_v1 }
  0x14   : > { %200 = vst.msk [vmem:[#allocation4] sm:$0xff] %vm199_vm1, %v734_v1  ;;  %201 = vst.msk [vmem:[#allocation4 + $0x8] sm:$0xff] %vm199_vm1, %v734_v1 }
  0x15 PF: > { %v203_v2 = vld [vmem:[%s179_s18] sm:$0x1]  ;;  %v222_v3 = vlaneseq  ;;  %v735_v4 = vmov 0   ;;  %v219_v14 = vld [vmem:[%s784_s26 + $0x78] sm:$0xff]  ;;  %v736_v15 = vmov 0.0   ;;  %v218_v16 = vld [vmem:[%s784_s26 + $0x70] sm:$0xff] }
  0x16   : > { %vm220_vm2 = vcmp.eq.s32.totalorder %v203_v2, 0  ;;  %vm332_vm3 = vcmp.eq.s32.totalorder %v203_v2, 1  ;;  %682 = vset.pattern.permute.xlu1 %v735_v4  ;;  %683 = vset.pattern.permute.xlu0 %v735_v4  ;;  %v202_v9 = vld [vmem:[%s183_s22] sm:$0xff]  ;;  %v217_v17 = vld [vmem:[%s784_s26 + $0x68] sm:$0xff]  ;;  %v215_v19 = vld [vmem:[%s784_s26 + $0x58] sm:$0xff]  ;;  %vm249_vm6 = vcmask 7168  }
  0x17   : > { %v223_v5 = vshrl.u32 %v222_v3, 7  ;;  %v221_v6 = vsel %vm220_vm2, 1, %v735_v4  ;;  %v333_v7 = vsel %vm332_vm3, 1, %v735_v4  ;;  %589 = vmatprep.subr.mxu0 %v736_v15  ;;  %624 = vmatprep.subr.mxu1 %v736_v15  ;;  %v216_v18 = vld [vmem:[%s784_s26 + $0x60] sm:$0xff]  ;;  %v214_v20 = vld [vmem:[%s784_s26 + $0x50] sm:$0xff]  ;;  %v213_v21 = vld [vmem:[%s784_s26 + $0x48] sm:$0xff] }
  0x18   : > { %590 = vmatpush3.msra.mxu0 %v219_v14  ;;  %625 = vmatpush3.msra.mxu1 %v219_v14  ;;  %v212_v23 = vld [vmem:[%s784_s26 + $0x40] sm:$0xff]  ;;  %v211_v26 = vld [vmem:[%s784_s26 + $0x38] sm:$0xff]  ;;  %v210_v29 = vld [vmem:[%s784_s26 + $0x30] sm:$0xff]  ;;  %vm737_vm7 = vmmov 0   ;;  %vm329_vm8 = vcmask 261120   ;;  %p550_p6 = scmp.ne.s32.totalorder %s768_s13, 1 }
  0x19   : > { %v224_v8 = vsub.s32 0, %v223_v5  ;;  %591 = vmatprep.subr.mxu0 %v736_v15  ;;  %626 = vmatprep.subr.mxu1 %v736_v15  ;;  %v228_v22 = vld [vmem:[#allocation2] sm:$0xff]  ;;  %v341_v27 = vld [vmem:[#allocation2 + $0x8] sm:$0xff]  ;;  %v207_v36 = vld [vmem:[%s784_s26 + $0x18] sm:$0xff] }
  0x1a   : > { %592 = vmatpush3.msra.mxu0 %v218_v16  ;;  %627 = vmatpush3.msra.mxu1 %v218_v16  ;;  %v209_v33 = vld [vmem:[%s784_s26 + $0x28] sm:$0xff]  ;;  %v208_v35 = vld [vmem:[%s784_s26 + $0x20] sm:$0xff]  ;;  %v206_v38 = vld [vmem:[%s784_s26 + $0x10] sm:$0xff] }
  0x1b   : > { %v787_v10 = vrot.slane %v221_v6, %v224_v8  ;;  %v789_v11 = vrot.slane %v333_v7, %v224_v8  ;;  %593 = vmatprep.subr.mxu0 %v736_v15  ;;  %628 = vmatprep.subr.mxu1 %v736_v15  ;;  %v205_v39 = vld [vmem:[%s784_s26 + $0x8] sm:$0xff]  ;;  %v204_v40 = vld [vmem:[%s784_s26] sm:$0xff]  ;;  %v244_v53 = vld [vmem:[#allocation3] sm:$0xff] }
  0x1c   : > { %594 = vmatpush3.msra.mxu0 %v217_v17  ;;  %629 = vmatpush3.msra.mxu1 %v217_v17  ;;  %v358_v56 = vld [vmem:[#allocation3 + $0x8] sm:$0xff]  ;;  %v251_v62 = vld [vmem:[#allocation4] sm:$0xff]  ;;  %v365_v0 = vld [vmem:[#allocation4 + $0x8] sm:$0xff] }
  0x1d   : > { %vm226_vm4 = vcmp.eq.s32.totalorder %v787_v10, 1  ;;  %vm338_vm5 = vcmp.eq.s32.totalorder %v789_v11, 1  ;;  %595 = vmatprep.subr.mxu0 %v736_v15  ;;  %630 = vmatprep.subr.mxu1 %v736_v15 }
  0x1e   : > { %v795_v12 = vsel %vm226_vm4, %v202_v9, -1e+30  ;;  %v800_v13 = vsel %vm338_vm5, %v202_v9, -1e+30  ;;  %596 = vmatpush3.msra.mxu0 %v216_v18  ;;  %631 = vmatpush3.msra.mxu1 %v216_v18 }
  0x1f   : > { %229 = vmax.xlane.f32.xlu0 %v795_v12  ;;  %597 = vmatprep.subr.mxu0 %v736_v15 }
  0x20   : > { %632 = vmatprep.subr.mxu1 %v736_v15  ;;  %598 = vmatpush3.msra.mxu0 %v215_v19 }
  0x21   : > { %633 = vmatpush3.msra.mxu1 %v215_v19  ;;  %599 = vmatprep.subr.mxu0 %v736_v15 }
  0x22   : > { %634 = vmatprep.subr.mxu1 %v736_v15  ;;  %600 = vmatpush3.msra.mxu0 %v214_v20 }
  0x23   : > { %342 = vmax.xlane.f32.xlu0 %v800_v13  ;;  %635 = vmatpush3.msra.mxu1 %v214_v20 }
  0x24   : > { %601 = vmatprep.subr.mxu0 %v736_v15  ;;  %636 = vmatprep.subr.mxu1 %v736_v15 }
  0x25   : > { %602 = vmatpush3.msra.mxu0 %v213_v21  ;;  %637 = vmatpush3.msra.mxu1 %v213_v21 }
  0x26   : > { %603 = vmatprep.subr.mxu0 %v736_v15  ;;  %638 = vmatprep.subr.mxu1 %v736_v15 }
  0x27   : > { %604 = vmatpush3.msra.mxu0 %v212_v23  ;;  %639 = vmatpush3.msra.mxu1 %v212_v23 }
  0x28   : > { %605 = vmatprep.subr.mxu0 %v736_v15  ;;  %640 = vmatprep.subr.mxu1 %v736_v15 }
  0x29   : > { %606 = vmatpush3.msra.mxu0 %v211_v26  ;;  %641 = vmatpush3.msra.mxu1 %v211_v26 }
  0x2a   : > { %607 = vmatprep.subr.mxu0 %v736_v15  ;;  %642 = vmatprep.subr.mxu1 %v736_v15 }
  0x2b   : > { %608 = vmatpush3.msra.mxu0 %v210_v29  ;;  %643 = vmatpush3.msra.mxu1 %v210_v29 }
  0x2c   : > { %609 = vmatprep.subr.mxu0 %v736_v15  ;;  %644 = vmatprep.subr.mxu1 %v736_v15 }
  0x2d   : > { %610 = vmatpush3.msra.mxu0 %v209_v33  ;;  %645 = vmatpush3.msra.mxu1 %v209_v33 }
  0x2e   : > { %611 = vmatprep.subr.mxu0 %v736_v15  ;;  %646 = vmatprep.subr.mxu1 %v736_v15 }
  0x2f   : > { %612 = vmatpush3.msra.mxu0 %v208_v35  ;;  %647 = vmatpush3.msra.mxu1 %v208_v35 }
  0x30   : > { %613 = vmatprep.subr.mxu0 %v736_v15  ;;  %648 = vmatprep.subr.mxu1 %v736_v15 }
  0x31   : > { %614 = vmatpush3.msra.mxu0 %v207_v36  ;;  %649 = vmatpush3.msra.mxu1 %v207_v36 }
  0x32   : > { %615 = vmatprep.subr.mxu0 %v736_v15  ;;  %650 = vmatprep.subr.mxu1 %v736_v15 }
  0x33   : > { %616 = vmatpush3.msra.mxu0 %v206_v38  ;;  %621 = vmatprep.mubr.msk.f32.mxu0 %vm737_vm7, %v736_v15 }
  0x34   : > { %617 = vmatprep.subr.mxu0 %v736_v15  ;;  %651 = vmatpush3.msra.mxu1 %v206_v38 }
  0x35   : > { %618 = vmatpush3.msra.mxu0 %v205_v39  ;;  %652 = vmatprep.subr.mxu1 %v736_v15 }
  0x36   : > { %619 = vmatprep.subr.mxu0 %v736_v15  ;;  %653 = vmatpush3.msra.mxu1 %v205_v39 }
  0x37   : > { %620 = vmatpush3.msra.mxu0 %v204_v40  ;;  %656 = vmatprep.mubr.msk.f32.mxu1 %vm737_vm7, %v736_v15 }
  0x38   : > { %654 = vmatprep.subr.mxu1 %v736_v15 }
  0x39   : > { %655 = vmatpush3.msra.mxu1 %v204_v40 }
  0xa8   : > { %v230_v24 = vpop.xlane.xlu0 %229 }
  0xa9   : > { %v231_v25 = vmax.f32 %v228_v22, %v230_v24 }
  0xab   : > { %v232_v28 = vsub.f32 %v228_v22, %v231_v25  ;;  %331 = vst.msk [vmem:[#allocation2] sm:$0xff] %vm249_vm6, %v231_v25  ;;  %237 = vperm.xlu1 %682, %v231_v25  }
  0xac   : > { %v343_v30 = vpop.xlane.xlu0 %342 }
  0xad   : > { %v233_v31 = vmul.f32 1.442695, %v232_v28  ;;  %v344_v32 = vmax.f32 %v341_v27, %v343_v30 }
  0xaf   : > { %684 = vpow2.f32 %v233_v31  ;;  %v345_v34 = vsub.f32 %v341_v27, %v344_v32  ;;  %444 = vst.msk [vmem:[#allocation2 + $0x8] sm:$0xff] %vm249_vm6, %v344_v32  ;;  %350 = vperm.xlu1 %682, %v344_v32  }
  0xb1   : > { %v346_v37 = vmul.f32 1.442695, %v345_v34 }
  0xb3   : > { %686 = vpow2.f32 %v346_v37 }
  0xbc   : > { %v685_v41 = vpop.eup %684 }
  0xbd   : > { %254 = vperm.xlu1 %682, %v685_v41   ;;  %v245_v54 = vmul.f32 %v685_v41, %v244_v53 }
  0xc0   : > { %v687_v42 = vpop.eup %686 }
  0xc1   : > { %368 = vperm.xlu1 %682, %v687_v42   ;;  %v359_v58 = vmul.f32 %v687_v42, %v358_v56 }
 0x126   : > { %v238_v43 = vpop.permute.xlu1 %237 }
 0x127   : > { %v240_v44 = vsub.f32 %v795_v12, %v238_v43 }
 0x129   : > { %v241_v45 = vmul.f32 1.442695, %v240_v44 }
 0x12a   : > { %v351_v46 = vpop.permute.xlu1 %350 }
 0x12b   : > { %688 = vpow2.f32 %v241_v45  ;;  %v353_v47 = vsub.f32 %v800_v13, %v351_v46 }
 0x12d   : > { %v354_v48 = vmul.f32 1.442695, %v353_v47 }
 0x12f   : > { %690 = vpow2.f32 %v354_v48 }
 0x138   : > { %v689_v49 = vpop.eup %688  ;;  %v255_v61 = vpop.permute.xlu1 %254 }
 0x139   : > { %622 = vmatmul.mubr.msk.f32.vlgmr.msra.gmra.mxu0 %vm226_vm4, %v689_v49  ;;  %v243_v50 = vsel %vm226_vm4, %v689_v49, 0.0  ;;  %v257_v63 = vmul.f32 %v255_v61, %v251_v62 }
 0x13a   : > { %246 = vadd.xlane.f32.xlu0 %v243_v50 }
 0x13c   : > { %v691_v51 = vpop.eup %690  ;;  %v369_v1 = vpop.permute.xlu1 %368 }
 0x13d   : > { %657 = vmatmul.mubr.msk.f32.vlgmr.msra.gmra.mxu1 %vm338_vm5, %v691_v51  ;;  %v356_v52 = vsel %vm338_vm5, %v691_v51, 0.0  ;;  %v371_v5 = vmul.f32 %v369_v1, %v365_v0 }
 0x13e   : > { %360 = vadd.xlane.f32.xlu0 %v356_v52 }
 0x1c3   : > { %v247_v55 = vpop.xlane.xlu0 %246 }
 0x1c4   : > { %v248_v57 = vadd.f32 %v247_v55, %v245_v54 }
 0x1c6   : > { %250 = vst.msk [vmem:[#allocation3] sm:$0xff] %vm249_vm6, %v248_v57 }
 0x1c7   : > { %v361_v59 = vpop.xlane.xlu0 %360 }
 0x1c8   : > { %v362_v60 = vadd.f32 %v361_v59, %v359_v58 }
 0x1ca   : > { %363 = vst.msk [vmem:[#allocation3 + $0x8] sm:$0xff] %vm249_vm6, %v362_v60 }
 0x1f9   : > { %v324_v2 = vpop.f32.mrf.mxu0 }
 0x1fa   : > { %v328_v3 = vadd.f32 %v324_v2, %v257_v63 }
 0x1fb   : > { %v623_v4 = vpop.f32.mrf.mxu0 }
 0x1fc   : > { %330 = vst.msk [vmem:[#allocation4] sm:$0xff] %vm329_vm8, %v328_v3  ;;  %448 = sbr.rel (%p550_p6) target bundleno = 661 (0x295), region = 40 }
 0x1fd   : > { %v438_v6 = vpop.f32.mrf.mxu1 }
 0x1fe   : > { %v442_v7 = vadd.f32 %v438_v6, %v371_v5 }
 0x1ff   : > { %v658_v8 = vpop.f32.mrf.mxu1 }
 0x200   : > { %443 = vst.msk [vmem:[#allocation4 + $0x8] sm:$0xff] %vm329_vm8, %v442_v7 }
 0x201   : > { %v449_v9 = vld [vmem:[#allocation3] sm:$0xff]  ;;  %v450_v10 = vld [vmem:[#allocation3 + $0x8] sm:$0xff]  ;;  %v738_v11 = vmov 0  }
 0x202   : > { %692 = vset.pattern.permute.xlu0 %v738_v11  ;;  %v451_v12 = vmax.f32 %v449_v9, 1e-30  ;;  %v452_v13 = vmax.f32 %v450_v10, 1e-30 }
 0x203   : > { %v455_v16 = vld [vmem:[#allocation4] sm:$0xff] }
 0x204   : > { %693 = vrcp.f32 %v451_v12 }
 0x205   : > { %695 = vrcp.f32 %v452_v13 }
 0x207   : > { %v456_v19 = vld [vmem:[#allocation4 + $0x8] sm:$0xff] }
 0x211   : > { %v694_v14 = vpop.eup %693 }
 0x212   : > { %459 = vperm.xlu0 %692, %v694_v14   ;;  %v696_v15 = vpop.eup %695 }
 0x216   : > { %464 = vperm.xlu0 %692, %v696_v15  }
 0x28d   : > { %v460_v17 = vpop.permute.xlu0 %459 }
 0x28e   : > { %v467_v18 = vmul.f32 %v460_v17, %v455_v16 }
 0x290   : > { %469 = vst.msk [vmem:[#allocation5] sm:$0xff] %vm329_vm8, %v467_v18 }
 0x291   : > { %v465_v20 = vpop.permute.xlu0 %464 }
 0x292   : > { %v468_v21 = vmul.f32 %v465_v20, %v456_v19 }
 0x294   : > { %470 = vst.msk [vmem:[#allocation5 + $0x8] sm:$0xff] %vm329_vm8, %v468_v21 }
 0x295 PF: > { %p663_p7 = scmp.eq.s32.totalorder %s768_s13, 1  ;;  %s739_s27 = smov [#allocation5]  }
 0x296   : > { %s477_s28 = sshll.u32 %s739_s27, 4  ;;  %s478_s28 = int_to_ptr.vmem [resolvable:$true] %s477_s28 }
 0x297   : > { %s697_s29 = scalar_lea.vmem %s478_s28, 256  ;;  %p704_p11 = scmp.lt.s32.totalorder %s478_s28, %s478_s28 }
 0x298   : > { %p698_p8 = scmp.ne.s32.totalorder %s478_s28, %s697_s29  ;;  %p705_p12 = scmp.lt.s32.totalorder %s697_s29, %s697_s29 }
 0x29a   : > { %p699_p9 = pnand %p698_p8, %p663_p7  ;;  %p706_p13 = por %p705_p12, %p704_p11 }
 0x29c   : > { %p700_p10 = pneg %p699_p9 }
 0x29e   : > { %p707_p0 = pnand %p706_p13, %p700_p10 }
 0x2a0   : > { %710 = shalt.err (!%p707_p0)
}
 0x2a1   : > { %s740_s30 = smov 128   ;;  %s741_s4 = smov 8  }
 0x2a2   : > { %660 = dma.vmem_to_hbm [thread:$0]  (%p663_p7), %s478_s28, 256, %s890_s3, [#allocation6], %s740_s30, %s740_s30, %s741_s4  }
 0x2a3   : > { %726 = dma.done.wait (%p663_p7), [#allocation6], 256  }
 0x2a4   : > { %728 = vsyncadd (%p663_p7), [#allocation6], 4294967040 }
 0x2a5 PF: > { %s14_s12 = sadd.s32 1, %s731_s12  }
 0x2a6   : > { %p11_p1 = scmp.ge.s32.totalorder %s14_s12, 4  }
 0x2a8   :  { %13 = sbr.rel (!%p11_p1) target bundleno = 1 (0x1), region = 76 }
 0x2ad   :  { %493 = vsyncpa [#allocation6], 1 }
 0x2ae   :  { %495 = vsyncpa [#allocation6 + $0x1], 1 }

</bundles_post_ra>
